<compile_context>
chip_gen: v7x
topology: tpu7x:2x2x1
jax: 0.10.0
libtpu: 0.0.40
codegen_flags: <defaults>
</compile_context>

<pallas_src>
import jax
import jax.numpy as jnp
from jax import lax
from jax.experimental import pallas as pl
from jax.experimental.pallas import tpu as pltpu


def _round_up(x, m):
    return (x + m - 1) // m * m


def _default_vmem_limit_bytes():
    """~96 MiB on v5e/v6e (128 MiB physical VMEM), ~48 MiB on v7x (64 MiB)."""
    try:
        cap = int(pltpu.get_tpu_info().vmem_capacity_bytes)
    except Exception:
        return 48 << 20          # safe ceiling on every generation
    return min(96 << 20, (cap * 3) // 4)


def _lora_kernel(x_ref, w_ref, b_ref, xa_ref, lb_ref, o_ref, acc_ref):
    """One (i, j, k) grid step of  y = x @ W^T + b + (x @ A) @ B.

    x_ref  : [tm, tk]  activation tile           (block index (i, k))
    w_ref  : [tn, tk]  Linear weight tile         (block index (j, k)); contracted
                       on its dim 1, so W^T is never materialized.
    b_ref  : [1,  tn]  bias tile
    xa_ref : [tm, Rp]  precomputed x @ lora_A, rank zero-padded to 128 lanes
    lb_ref : [Rp, tn]  lora_B tile (f32), rank zero-padded to 128
    o_ref  : [tm, tn]  output tile
    acc_ref: [tm, tn]  f32 accumulator scratch, resident across the K axis
    """
    k = pl.program_id(2)

    @pl.when(k == 0)
    def _init():
        acc_ref[...] = jnp.zeros_like(acc_ref)

    # Main GEMM on the MXU: contract x's feature dim with W's dim 1 (x @ W^T),
    # accumulating in f32.  The MXU consumes the transposed RHS natively.
    acc_ref[...] += lax.dot_general(
        x_ref[...], w_ref[...],
        dimension_numbers=(((1,), (1,)), ((), ())),
        preferred_element_type=jnp.float32)

    # Epilogue once per output tile: low-rank update (single 128-wide MXU
    # K-slice, exact because padded lanes are zero), bias add, one HBM store.
    @pl.when(k == pl.num_programs(2) - 1)
    def _epilogue():
        lora = jnp.dot(xa_ref[...], lb_ref[...],
                       preferred_element_type=jnp.float32)
        o_ref[...] = (acc_ref[...] + b_ref[...].astype(jnp.float32) + lora
                      ).astype(o_ref.dtype)


def lora_linear_forward(x, w, b, lora_a, lora_b, *, tm=1024, tn=512, tk=1024):
    """LoRALayer forward: x @ W.T + b + (x @ A) @ B.

    x: [M, H]; w: [H, H] (PyTorch nn.Linear weight, [out, in]); b: [H];
    lora_a: [H, R]; lora_b: [R, H].  f32 or bf16 params accepted; all
    accumulation is f32 (one final cast to x.dtype).
    """
    M, H = x.shape
    R = lora_a.shape[1]

    # Rank-R first LoRA matmul hoisted out of the tiled loop (tiny, kept f32).
    xa = jnp.dot(x, lora_a, preferred_element_type=jnp.float32)

    # ----- tile selection ----------------------------------------------------
    lane_H = _round_up(H, 128)

    # One M tile whenever the (rounded) batch fits in a <=1024-row tile: W then
    # streams from HBM exactly once, and odd batch sizes are not over-padded.
    tm = min(tm, _round_up(M, 8))
    Mp = _round_up(M, tm)

    tk = min(tk, lane_H)
    Hk = _round_up(H, tk)                      # padded in_features (K) extent

    tn = min(tn, lane_H)
    # When M collapses to a single tile, keep >= 2 parallel N tiles (if the
    # layer is wide enough) so both TensorCores get work on v7x megacore.
    if Mp // tm == 1 and lane_H >= 256 and lane_H // tn < 2:
        tn = _round_up(pl.cdiv(lane_H, 2), 128)
    Hn = _round_up(lane_H, tn)                 # padded out_features (N) extent

    Rp = _round_up(R, 128)                     # lane-dense LoRA rank

    # ----- padding (no-op copies when shapes are already lane aligned) -------
    x_p = jnp.pad(x, ((0, Mp - M), (0, Hk - H)))
    w_p = jnp.pad(w, ((0, Hn - H), (0, Hk - H)))
    b_p = jnp.pad(b, (0, Hn - H)).reshape(1, Hn)
    xa_p = jnp.pad(xa, ((0, Mp - M), (0, Rp - R)))
    lb_p = jnp.pad(lora_b.astype(jnp.float32), ((0, Rp - R), (0, Hn - H)))

    grid = (Mp // tm, Hn // tn, Hk // tk)

    bytes_x = jnp.dtype(x.dtype).itemsize
    bytes_w = jnp.dtype(w.dtype).itemsize
    cost = pl.CostEstimate(
        flops=2 * Mp * Hn * Hk + 2 * Mp * Rp * Hn,
        transcendentals=0,
        bytes_accessed=(Mp * Hk * bytes_x                 # x (once per N tile? <=; advisory)
                        + (Mp // tm) * Hn * Hk * bytes_w  # W, once per M tile
                        + Hn * jnp.dtype(b.dtype).itemsize
                        + Mp * Rp * 4 + Rp * Hn * 4       # LoRA operands (f32)
                        + Mp * Hn * bytes_x))             # output

    out = pl.pallas_call(
        _lora_kernel,
        out_shape=jax.ShapeDtypeStruct((Mp, Hn), x.dtype),
        grid_spec=pltpu.PrefetchScalarGridSpec(
            num_scalar_prefetch=0,
            grid=grid,
            in_specs=[
                pl.BlockSpec((tm, tk), lambda i, j, k: (i, k)),   # x
                pl.BlockSpec((tn, tk), lambda i, j, k: (j, k)),   # W (no transpose copy)
                pl.BlockSpec((1, tn), lambda i, j, k: (0, j)),    # bias
                pl.BlockSpec((tm, Rp), lambda i, j, k: (i, 0)),   # x @ A (hoisted)
                pl.BlockSpec((Rp, tn), lambda i, j, k: (0, j)),   # lora_B
            ],
            out_specs=pl.BlockSpec((tm, tn), lambda i, j, k: (i, j)),
            scratch_shapes=[pltpu.VMEM((tm, tn), jnp.float32)],
        ),
        compiler_params=pltpu.CompilerParams(
            # M / N independent (sharded across TCs on v7x); K (reduction) last.
            dimension_semantics=("parallel", "parallel", "arbitrary"),
            vmem_limit_bytes=_default_vmem_limit_bytes(),
        ),
        cost_estimate=cost,
    )(x_p, w_p, b_p, xa_p, lb_p)

    return out[:M, :H]


def _reference(x, w, b, lora_a, lora_b):
    return x @ w.T + b + (x @ lora_a) @ lora_b


if __name__ == "__main__":
    key = jax.random.PRNGKey(0)

    # --- Check 1: small shapes matching the module spec (padding path) ------
    k_x, k_w, k_b, k_a, k_bb = jax.random.split(key, 5)
    batch, hidden, rank = 8, 32, 4
    x = jax.random.normal(k_x, (batch, hidden), dtype=jnp.float32)
    w = jax.random.normal(k_w, (hidden, hidden), dtype=jnp.float32) * 0.1
    b = jax.random.normal(k_b, (hidden,), dtype=jnp.float32) * 0.1
    lora_a = jax.random.normal(k_a, (hidden, rank), dtype=jnp.float32)
    lora_b = jax.random.normal(k_bb, (rank, hidden), dtype=jnp.float32)

    out = jax.block_until_ready(lora_linear_forward(x, w, b, lora_a, lora_b))
    ref = _reference(x, w, b, lora_a, lora_b)
    assert out.shape == (batch, hidden)
    assert jnp.allclose(out, ref, atol=1e-4, rtol=1e-4)

    # --- Check 2: larger shapes exercising single-pass-over-W + 2 N tiles ----
    k2 = jax.random.split(key, 2)[1]
    k_x, k_w, k_b, k_a, k_bb = jax.random.split(k2, 5)
    batch2, hidden2, rank2 = 384, 512, 8
    x2 = jax.random.normal(k_x, (batch2, hidden2), dtype=jnp.float32)
    w2 = jax.random.normal(k_w, (hidden2, hidden2), dtype=jnp.float32) * 0.1
    b2 = jax.random.normal(k_b, (hidden2,), dtype=jnp.float32) * 0.1
    lora_a2 = jax.random.normal(k_a, (hidden2, rank2), dtype=jnp.float32)
    lora_b2 = jax.random.normal(k_bb, (rank2, hidden2), dtype=jnp.float32)

    out2 = jax.block_until_ready(
        lora_linear_forward(x2, w2, b2, lora_a2, lora_b2))
    ref2 = _reference(x2, w2, b2, lora_a2, lora_b2)
    assert out2.shape == (batch2, hidden2)
    assert jnp.allclose(out2, ref2, atol=1e-2, rtol=1e-3)

    print("KERNEL_OK")
</pallas_src>

<mosaic_0001>
module attributes {stable_mosaic.version = 11 : i64} {
  func.func @_lora_kernel(%arg0: i32, %arg1: i32, %arg2: i32, %arg3: memref<8x128xf32, #tpu.memory_space<vmem>>, %arg4: memref<128x128xf32, #tpu.memory_space<vmem>>, %arg5: memref<1x128xf32, #tpu.memory_space<vmem>>, %arg6: memref<8x128xf32, #tpu.memory_space<vmem>>, %arg7: memref<128x128xf32, #tpu.memory_space<vmem>>, %arg8: memref<8x128xf32, #tpu.memory_space<vmem>>, %arg9: memref<8x128xf32, #tpu.memory_space<vmem>>) attributes {dimension_semantics = [#tpu.dimension_semantics<parallel>, #tpu.dimension_semantics<parallel>, #tpu.dimension_semantics<arbitrary>], iteration_bounds = array<i64: 1, 1, 1>, scalar_prefetch = 0 : i64, scratch_operands = 1 : i64, tpu.core_type = #tpu.core_type<tc>, window_params = [{transform_indices = @transform_0, window_bounds = array<i64: 8, 128>}, {transform_indices = @transform_1, window_bounds = array<i64: 128, 128>}, {transform_indices = @transform_2, window_bounds = array<i64: 1, 128>}, {transform_indices = @transform_3, window_bounds = array<i64: 8, 128>}, {transform_indices = @transform_4, window_bounds = array<i64: 128, 128>}, {transform_indices = @transform_5, window_bounds = array<i64: 8, 128>}]} {
    %c0_i32 = arith.constant 0 : i32
    %0 = arith.cmpi eq, %arg2, %c0_i32 : i32
    %1 = arith.extui %0 : i1 to i32
    %c0_i32_0 = arith.constant 0 : i32
    %2 = arith.cmpi ne, %1, %c0_i32_0 : i32
    scf.if %2 {
      %cst_10 = arith.constant 0.000000e+00 : f32
      %12 = vector.broadcast %cst_10 : f32 to vector<8x128xf32>
      %c0_11 = arith.constant 0 : index
      %c0_12 = arith.constant 0 : index
      %13 = vector.load %arg9[%c0_11, %c0_12] : memref<8x128xf32, #tpu.memory_space<vmem>>, vector<8x128xf32>
      tpu.vector_store %arg9[%c0_11, %c0_12], %12 {strides = array<i32>} : memref<8x128xf32, #tpu.memory_space<vmem>>, vector<8x128xf32>,
    } else {
    }
    %c0 = arith.constant 0 : index
    %c0_1 = arith.constant 0 : index
    %3 = vector.load %arg9[%c0, %c0_1] : memref<8x128xf32, #tpu.memory_space<vmem>>, vector<8x128xf32>
    %c0_2 = arith.constant 0 : index
    %c0_3 = arith.constant 0 : index
    %4 = vector.load %arg3[%c0_2, %c0_3] : memref<8x128xf32, #tpu.memory_space<vmem>>, vector<8x128xf32>
    %c0_4 = arith.constant 0 : index
    %c0_5 = arith.constant 0 : index
    %5 = vector.load %arg4[%c0_4, %c0_5] : memref<128x128xf32, #tpu.memory_space<vmem>>, vector<128x128xf32>
    %cst = arith.constant dense<0.000000e+00> : vector<8x128xf32>
    %6 = tpu.matmul %4, %5, %cst {dimension_numbers = #tpu.dot_dimension_numbers<[1], [1], [0], [0], [0, 0, 1, 0], [], []>} : vector<8x128xf32>, vector<128x128xf32>, vector<8x128xf32> -> vector<8x128xf32>
    %7 = arith.addf %3, %6 : vector<8x128xf32>
    %c0_6 = arith.constant 0 : index
    %c0_7 = arith.constant 0 : index
    %8 = vector.load %arg9[%c0_6, %c0_7] : memref<8x128xf32, #tpu.memory_space<vmem>>, vector<8x128xf32>
    tpu.vector_store %arg9[%c0_6, %c0_7], %7 {strides = array<i32>} : memref<8x128xf32, #tpu.memory_space<vmem>>, vector<8x128xf32>,
    %c0_i32_8 = arith.constant 0 : i32
    %9 = arith.cmpi eq, %arg2, %c0_i32_8 : i32
    %10 = arith.extui %9 : i1 to i32
    %c0_i32_9 = arith.constant 0 : i32
    %11 = arith.cmpi ne, %10, %c0_i32_9 : i32
    scf.if %11 {
      %c0_10 = arith.constant 0 : index
      %c0_11 = arith.constant 0 : index
      %12 = vector.load %arg6[%c0_10, %c0_11] : memref<8x128xf32, #tpu.memory_space<vmem>>, vector<8x128xf32>
      %c0_12 = arith.constant 0 : index
      %c0_13 = arith.constant 0 : index
      %13 = vector.load %arg7[%c0_12, %c0_13] : memref<128x128xf32, #tpu.memory_space<vmem>>, vector<128x128xf32>
      %cst_14 = arith.constant dense<0.000000e+00> : vector<8x128xf32>
      %14 = tpu.matmul %12, %13, %cst_14 {dimension_numbers = #tpu.dot_dimension_numbers<[1], [0], [0], [1], [0, 0, 1, 1], [], []>} : vector<8x128xf32>, vector<128x128xf32>, vector<8x128xf32> -> vector<8x128xf32>
      %c0_15 = arith.constant 0 : index
      %c0_16 = arith.constant 0 : index
      %15 = vector.load %arg9[%c0_15, %c0_16] : memref<8x128xf32, #tpu.memory_space<vmem>>, vector<8x128xf32>
      %c0_17 = arith.constant 0 : index
      %c0_18 = arith.constant 0 : index
      %16 = vector.load %arg5[%c0_17, %c0_18] : memref<1x128xf32, #tpu.memory_space<vmem>>, vector<1x128xf32>
      %17 = vector.broadcast %16 : vector<1x128xf32> to vector<8x128xf32>
      %18 = arith.addf %15, %17 : vector<8x128xf32>
      %19 = arith.addf %18, %14 : vector<8x128xf32>
      %c0_19 = arith.constant 0 : index
      %c0_20 = arith.constant 0 : index
      %20 = vector.load %arg8[%c0_19, %c0_20] : memref<8x128xf32, #tpu.memory_space<vmem>>, vector<8x128xf32>
      tpu.vector_store %arg8[%c0_19, %c0_20], %19 {strides = array<i32>} : memref<8x128xf32, #tpu.memory_space<vmem>>, vector<8x128xf32>,
    } else {
    }
    return
  }
  func.func @transform_0(%arg0: i32, %arg1: i32, %arg2: i32) -> (i32, i32) {
    %c0_i32 = arith.constant 0 : i32
    return %arg0, %arg2 : i32, i32
  }
  func.func @transform_1(%arg0: i32, %arg1: i32, %arg2: i32) -> (i32, i32) {
    %c0_i32 = arith.constant 0 : i32
    return %arg1, %arg2 : i32, i32
  }
  func.func @transform_2(%arg0: i32, %arg1: i32, %arg2: i32) -> (i32, i32) {
    %c0_i32 = arith.constant 0 : i32
    %c0_i32_0 = arith.constant 0 : i32
    return %c0_i32, %arg1 : i32, i32
  }
  func.func @transform_3(%arg0: i32, %arg1: i32, %arg2: i32) -> (i32, i32) {
    %c0_i32 = arith.constant 0 : i32
    %c0_i32_0 = arith.constant 0 : i32
    return %arg0, %c0_i32 : i32, i32
  }
  func.func @transform_4(%arg0: i32, %arg1: i32, %arg2: i32) -> (i32, i32) {
    %c0_i32 = arith.constant 0 : i32
    %c0_i32_0 = arith.constant 0 : i32
    return %c0_i32, %arg1 : i32, i32
  }
  func.func @transform_5(%arg0: i32, %arg1: i32, %arg2: i32) -> (i32, i32) {
    %c0_i32 = arith.constant 0 : i32
    return %arg0, %arg1 : i32, i32
  }
}

</mosaic_0001>

<bundles_post_ra>
// kernel: tpu_custom_call.1
= control target key start
LH: loop header
LB: loop body
LE: loop exit
PB: predicated region body
PF: predicated region fallthrough
CT: control target
= control target key end

     0   :  { %10 = vsyncpa [#allocation4], 0  ;;  %s645_s0 = inlined_call_operand.hbm [shape: f32[8,128], index: 0, kind: input, shape index: {}]   ;;  %s646_s1 = inlined_call_operand.hbm [shape: f32[128,128], index: 1, kind: input, shape index: {}]   ;;  %s647_s2 = inlined_call_operand.vmem [shape: f32[1,128], index: 2, kind: input, shape index: {}]   ;;  %s648_s3 = inlined_call_operand.vmem [shape: f32[8,128], index: 3, kind: input, shape index: {}]   ;;  %s649_s4 = inlined_call_operand.hbm [shape: f32[128,128], index: 4, kind: input, shape index: {}]   ;;  %s650_s5 = inlined_call_operand.hbm [shape: f32[8,128], index: 5, kind: output, shape index: {}]  }
   0x1   :  { %11 = vsyncpa [#allocation7], 0 }
   0x2   :  { %12 = vsyncpa [#allocation5], 0  ;;  %s530_s18 = smov [#allocation6]   ;;  %s436_s22 = scalar_lea.hbm %s646_s1, 2048 }
   0x3   :  { %s28_s19 = sshll.u32 %s530_s18, 4  ;;  %p437_p0 = scmp.ne.s32.totalorder %s646_s1, %s436_s22  ;;  %s29_s19 = int_to_ptr.vmem [resolvable:$true] %s28_s19 }
   0x4   :  { %p440_p1 = scmp.lt.u32.totalorder %s436_s22, %s646_s1 }
   0x6   :  { %p442_p2 = pnand %p440_p1, %p437_p0 }
   0x8   :  { %445 = shalt.err (!%p442_p2)
}
   0x9   :  { %s446_s27 = scalar_lea.vmem %s29_s19, 2048  ;;  %p451_p4 = scmp.lt.s32.totalorder %s29_s19, %s29_s19 }
   0xa   :  { %p447_p3 = scmp.ne.s32.totalorder %s29_s19, %s446_s27  ;;  %p452_p5 = scmp.lt.s32.totalorder %s446_s27, %s446_s27 }
   0xc   :  { %p453_p6 = por %p452_p5, %p451_p4 }
   0xe   :  { %p454_p7 = pnand %p453_p6, %p447_p3 }
  0x10   :  { %457 = shalt.err (!%p454_p7)
}
  0x11   :  { %s531_s28 = smov 128   ;;  %s532_s29 = smov 8  }
  0x12   :  { %34 = dma.hbm_to_vmem [thread:$0]  %s646_s1, 2048, %s29_s19, [#allocation7], %s531_s28, %s531_s28, %s532_s29  }
  0x13   :  { %s533_s7 = smov [#allocation3]   ;;  %s534_s9 = smov [#allocation8]  }
  0x14   :  { %s19_s8 = sshll.u32 %s533_s7, 4  ;;  %s44_s10 = sshll.u32 %s534_s9, 4  ;;  %s20_s8 = int_to_ptr.vmem [resolvable:$true] %s19_s8  ;;  %s45_s10 = int_to_ptr.vmem [resolvable:$true] %s44_s10 }
  0x15   :  { %s458_s13 = scalar_lea.hbm %s645_s0, 128 }
  0x16   :  { %p459_p8 = scmp.ne.s32.totalorder %s645_s0, %s458_s13  ;;  %p462_p9 = scmp.lt.u32.totalorder %s458_s13, %s645_s0 }
  0x18   :  { %p464_p10 = pnand %p462_p9, %p459_p8 }
  0x1a   :  { %467 = shalt.err (!%p464_p10)
}
  0x1b   :  { %s468_s1 = scalar_lea.vmem %s20_s8, 128  ;;  %p473_p12 = scmp.lt.s32.totalorder %s20_s8, %s20_s8 }
  0x1c   :  { %p469_p11 = scmp.ne.s32.totalorder %s20_s8, %s468_s1  ;;  %p474_p13 = scmp.lt.s32.totalorder %s468_s1, %s468_s1 }
  0x1e   :  { %p475_p0 = por %p474_p13, %p473_p12 }
  0x20   :  { %p476_p1 = pnand %p475_p0, %p469_p11 }
  0x22   :  { %479 = shalt.err (!%p476_p1)
}
  0x23   :  { %22 = dma.hbm_to_vmem [thread:$0]  %s645_s0, 128, %s20_s8, [#allocation4]  }
  0x24   :  { %s480_s22 = scalar_lea.hbm %s649_s4, 2048 }
  0x25   :  { %p481_p2 = scmp.ne.s32.totalorder %s649_s4, %s480_s22  ;;  %p484_p3 = scmp.lt.u32.totalorder %s480_s22, %s649_s4 }
  0x27   :  { %p486_p4 = pnand %p484_p3, %p481_p2 }
  0x29   :  { %489 = shalt.err (!%p486_p4)
}
  0x2a   :  { %s490_s27 = scalar_lea.vmem %s45_s10, 2048  ;;  %p495_p6 = scmp.lt.s32.totalorder %s45_s10, %s45_s10 }
  0x2b   :  { %p491_p5 = scmp.ne.s32.totalorder %s45_s10, %s490_s27  ;;  %p496_p7 = scmp.lt.s32.totalorder %s490_s27, %s490_s27 }
  0x2d   :  { %p497_p8 = por %p496_p7, %p495_p6 }
  0x2f   :  { %p498_p9 = pnand %p497_p8, %p491_p5 }
  0x31   :  { %501 = shalt.err (!%p498_p9)
}
  0x32   :  { %50 = dma.hbm_to_vmem [thread:$0]  %s649_s4, 2048, %s45_s10, [#allocation7], %s531_s28, %s531_s28, %s532_s29  }
  0x33   :  { %524 = dma.done.wait [#allocation4], 128  }
  0x34   :  { %525 = vsyncadd [#allocation4], 4294967168 }
  0x35   :  { %526 = dma.done.wait [#allocation7], 4096  }
  0x36   :  { %527 = vsyncadd [#allocation7], 4294963200  ;;  %v535_v0 = vmov 0.0|0.0   ;;  %vm536_vm0 = vmmov 0   ;;  %v537_v1 = vmov 0.0   ;;  %v67_v2 = vld [vmem:[#allocation6] sm:$0xff] }
  0x37   :  { %377 = vmatprep.subr.bf16.mxu1 %v535_v0  ;;  %401 = vmatprep.subr.bf16.mxu0 %v535_v0  ;;  %v68_v3 = vld [vmem:[#allocation6 + $0x8] sm:$0xff]  ;;  %v159_v5 = vld [vmem:[#allocation8] sm:$0xff]  ;;  %v69_v6 = vld [vmem:[#allocation6 + $0x10] sm:$0xff]  ;;  %s538_s6 = smov [#allocation9]  }
  0x38   :  { %374 = vmatprep.mubr.msk.f32.mxu0 %vm536_vm0, %v537_v1  ;;  %339 = vmatprep.mubr.msk.f32.mxu1 %vm536_vm0, %v537_v1  ;;  %v378_v4 = vpack.c.bf16 %v68_v3, %v67_v2  ;;  %v160_v7 = vld [vmem:[#allocation8 + $0x8] sm:$0xff]  ;;  %v70_v8 = vld [vmem:[#allocation6 + $0x18] sm:$0xff]  ;;  %v161_v10 = vld [vmem:[#allocation8 + $0x10] sm:$0xff]  ;;  %s262_s7 = sshll.u32 %s538_s6, 4  ;;  %s263_s7 = int_to_ptr.vmem [resolvable:$true] %s262_s7 }
  0x39   :  { %v402_v9 = vpack.c.bf16 %v160_v7, %v159_v5  ;;  %v162_v11 = vld [vmem:[#allocation8 + $0x18] sm:$0xff]  ;;  %v381_v13 = vpack.c.bf16 %v70_v8, %v69_v6  ;;  %v163_v14 = vld [vmem:[#allocation8 + $0x20] sm:$0xff]  ;;  %v164_v15 = vld [vmem:[#allocation8 + $0x28] sm:$0xff]  ;;  %s502_s8 = scalar_lea.vmem %s263_s7, 128  ;;  %p507_p11 = scmp.lt.s32.totalorder %s263_s7, %s263_s7 }
  0x3a   :  { %379 = vmatpush3.bf16.xpose.msra.mxu1 %v378_v4  ;;  %v405_v12 = vpack.c.bf16 %v162_v11, %v161_v10  ;;  %v408_v16 = vpack.c.bf16 %v164_v15, %v163_v14  ;;  %v165_v17 = vld [vmem:[#allocation8 + $0x30] sm:$0xff]  ;;  %v166_v18 = vld [vmem:[#allocation8 + $0x38] sm:$0xff]  ;;  %v71_v19 = vld [vmem:[#allocation6 + $0x20] sm:$0xff]  ;;  %p503_p10 = scmp.ne.s32.totalorder %s263_s7, %s502_s8  ;;  %p508_p12 = scmp.lt.s32.totalorder %s502_s8, %s502_s8 }
  0x3b   :  { %380 = vmatprep.subr.bf16.mxu1 %v535_v0  ;;  %403 = vmatpush3.bf16.msra.mxu0 %v402_v9  ;;  %v72_v20 = vld [vmem:[#allocation6 + $0x28] sm:$0xff]  ;;  %v411_v21 = vpack.c.bf16 %v166_v18, %v165_v17  ;;  %v167_v23 = vld [vmem:[#allocation8 + $0x40] sm:$0xff]  ;;  %v169_v26 = vld [vmem:[#allocation8 + $0x50] sm:$0xff] }
  0x3c   :  { %404 = vmatprep.subr.bf16.mxu0 %v535_v0  ;;  %v384_v22 = vpack.c.bf16 %v72_v20, %v71_v19  ;;  %v168_v24 = vld [vmem:[#allocation8 + $0x48] sm:$0xff]  ;;  %v170_v27 = vld [vmem:[#allocation8 + $0x58] sm:$0xff]  ;;  %v73_v28 = vld [vmem:[#allocation6 + $0x30] sm:$0xff]  ;;  %p509_p13 = por %p508_p12, %p507_p11 }
  0x3d   :  { %v414_v25 = vpack.c.bf16 %v168_v24, %v167_v23  ;;  %v74_v29 = vld [vmem:[#allocation6 + $0x38] sm:$0xff]  ;;  %v417_v30 = vpack.c.bf16 %v170_v27, %v169_v26  ;;  %v171_v32 = vld [vmem:[#allocation8 + $0x60] sm:$0xff]  ;;  %v172_v33 = vld [vmem:[#allocation8 + $0x68] sm:$0xff] }
  0x3e   :  { %v387_v31 = vpack.c.bf16 %v74_v29, %v73_v28  ;;  %v420_v34 = vpack.c.bf16 %v172_v33, %v171_v32  ;;  %v173_v35 = vld [vmem:[#allocation8 + $0x70] sm:$0xff]  ;;  %v174_v36 = vld [vmem:[#allocation8 + $0x78] sm:$0xff]  ;;  %v75_v37 = vld [vmem:[#allocation6 + $0x40] sm:$0xff]  ;;  %p510_p0 = pnand %p509_p13, %p503_p10 }
  0x3f   :  { %406 = vmatpush3.bf16.msra.mxu0 %v405_v12  ;;  %v76_v38 = vld [vmem:[#allocation6 + $0x48] sm:$0xff]  ;;  %v423_v39 = vpack.c.bf16 %v174_v36, %v173_v35  ;;  %v158_v41 = vld [vmem:[%s648_s3] sm:$0xff]  ;;  %v77_v42 = vld [vmem:[#allocation6 + $0x50] sm:$0xff] }
  0x40   :  { %407 = vmatprep.subr.bf16.mxu0 %v535_v0  ;;  %v390_v40 = vpack.c.bf16 %v76_v38, %v75_v37  ;;  %v78_v43 = vld [vmem:[#allocation6 + $0x58] sm:$0xff]  ;;  %v79_v45 = vld [vmem:[#allocation6 + $0x60] sm:$0xff]  ;;  %v80_v46 = vld [vmem:[#allocation6 + $0x68] sm:$0xff] }
  0x41   :  { %v393_v44 = vpack.c.bf16 %v78_v43, %v77_v42  ;;  %v396_v47 = vpack.c.bf16 %v80_v46, %v79_v45  ;;  %v81_v48 = vld [vmem:[#allocation6 + $0x70] sm:$0xff]  ;;  %v82_v49 = vld [vmem:[#allocation6 + $0x78] sm:$0xff] }
  0x42   :  { %382 = vmatpush3.bf16.xpose.msra.mxu1 %v381_v13  ;;  %v399_v50 = vpack.c.bf16 %v82_v49, %v81_v48  ;;  %v66_v51 = vld [vmem:[#allocation3] sm:$0xff] }
  0x43   :  { %383 = vmatprep.subr.bf16.mxu1 %v535_v0  ;;  %409 = vmatpush3.bf16.msra.mxu0 %v408_v16  ;;  %v272_v55 = vld [vmem:[%s647_s2] ss:$0 sm:$0xff] }
  0x44   :  { %410 = vmatprep.subr.bf16.mxu0 %v535_v0 }
  0x47   :  { %412 = vmatpush3.bf16.msra.mxu0 %v411_v21 }
  0x48   :  { %413 = vmatprep.subr.bf16.mxu0 %v535_v0 }
  0x4a   :  { %385 = vmatpush3.bf16.xpose.msra.mxu1 %v384_v22 }
  0x4b   :  { %386 = vmatprep.subr.bf16.mxu1 %v535_v0  ;;  %415 = vmatpush3.bf16.msra.mxu0 %v414_v25 }
  0x4c   :  { %416 = vmatprep.subr.bf16.mxu0 %v535_v0 }
  0x4f   :  { %418 = vmatpush3.bf16.msra.mxu0 %v417_v30 }
  0x50   :  { %419 = vmatprep.subr.bf16.mxu0 %v535_v0 }
  0x52   :  { %388 = vmatpush3.bf16.xpose.msra.mxu1 %v387_v31 }
  0x53   :  { %389 = vmatprep.subr.bf16.mxu1 %v535_v0  ;;  %421 = vmatpush3.bf16.msra.mxu0 %v420_v34 }
  0x54   :  { %422 = vmatprep.subr.bf16.mxu0 %v535_v0 }
  0x57   :  { %424 = vmatpush3.bf16.msra.mxu0 %v423_v39 }
  0x5a   :  { %391 = vmatpush3.bf16.xpose.msra.mxu1 %v390_v40  ;;  %375 = vmatmul.mubr.f32.vlgmr.msra.gmra.mrb[0].mxu0 %v158_v41 }
  0x5b   :  { %392 = vmatprep.subr.bf16.mxu1 %v535_v0 }
  0x62   :  { %394 = vmatpush3.bf16.xpose.msra.mxu1 %v393_v44 }
  0x63   :  { %395 = vmatprep.subr.bf16.mxu1 %v535_v0 }
  0x6a   :  { %397 = vmatpush3.bf16.xpose.msra.mxu1 %v396_v47 }
  0x6b   :  { %398 = vmatprep.subr.bf16.mxu1 %v535_v0 }
  0x72   :  { %400 = vmatpush3.bf16.xpose.msra.mxu1 %v399_v50 }
  0x79   :  { %340 = vmatmul.mubr.f32.vlgmr.msra.gmra.mrb[0].mxu1 %v66_v51 }
 0x12d   :  { %v241_v52 = vpop.f32.mrb[0].mxu0 }
 0x12e   :  { %v376_v53 = vpop.f32.mrb[1].mxu0 }
 0x14c   :  { %v149_v54 = vpop.f32.mrb[0].mxu1 }
 0x14d   :  { %v425_v56 = vadd.f32 %v241_v52, %v149_v54  ;;  %v341_v57 = vpop.f32.mrb[1].mxu1 }
 0x14f   :  { %v426_v58 = vadd.f32 %v425_v56, %v272_v55 }
 0x151   :  { %255 = vst [vmem:[#allocation9] sm:$0xff] %v426_v58 }
 0x152   :  { %513 = shalt.err (!%p510_p0)
}
 0x153   :  { %s514_s11 = scalar_lea.hbm %s650_s5, 128 }
 0x154   :  { %p515_p1 = scmp.ne.s32.totalorder %s650_s5, %s514_s11  ;;  %p518_p2 = scmp.lt.u32.totalorder %s514_s11, %s650_s5 }
 0x156   :  { %p520_p3 = pnand %p518_p2, %p515_p1 }
 0x158   :  { %523 = shalt.err (!%p520_p3)
}
 0x159   :  { %265 = dma.vmem_to_hbm [thread:$0]  %s263_s7, 128, %s650_s5, [#allocation5]  }
 0x15a   :  { %528 = dma.done.wait [#allocation5], 128  }
 0x15b   :  { %529 = vsyncadd [#allocation5], 4294967168 }
 0x15c   :  { %269 = vsyncpa [#allocation4], 1 }
 0x15d   :  { %270 = vsyncpa [#allocation7], 1 }
 0x15e   :  { %271 = vsyncpa [#allocation5], 1 }

</bundles_post_ra>
